<compile_context>
chip_gen: v6e
topology: v6e:2x2x1
jax: 0.10.0
libtpu: 0.0.40
codegen_flags: <defaults>
</compile_context>

<pallas_src>
import functools
import math

import jax
import jax.numpy as jnp
from jax.experimental import pallas as pl
from jax.experimental.pallas import tpu as pltpu


VMEM_LIMIT = 48 * 1024 * 1024   # <= v7x (64 MiB) budget, above v5e/v6e scoped defaults


# ----------------------------------------------------------------------------
# Small helpers
# ----------------------------------------------------------------------------
def _round_up(x, m):
    return ((x + m - 1) // m) * m


def _pick_m_tiling(M):
    """Pick (Mp, tm) so the activation needs no (or minimal) row padding."""
    M8 = _round_up(M, 8)
    if M8 <= 512:
        return M8, M8
    for tm in range(512, 127, -8):          # largest tm <= 512, multiple of 8, dividing M
        if M8 % tm == 0:
            return M8, tm
    Mp = _round_up(M, 256)
    return Mp, 256


def _pick_tile(dim, cap):
    """Largest multiple of 128 <= cap that divides `dim` (dim is a multiple of 128)."""
    t = max(128, (min(cap, dim) // 128) * 128)
    while dim % t:
        t -= 128
    return t


# ----------------------------------------------------------------------------
# Pallas kernels
# ----------------------------------------------------------------------------
def _gemm_kernel(*refs, relu, has_residual):
    """out = (A @ B) * scale + bias (+ residual) (+ ReLU).  Grid = (M, N, K) tiles."""
    if has_residual:
        a_ref, b_ref, scale_ref, bias_ref, res_ref, o_ref, acc_ref = refs
    else:
        a_ref, b_ref, scale_ref, bias_ref, o_ref, acc_ref = refs
        res_ref = None

    k = pl.program_id(2)

    @pl.when(k == 0)
    def _():
        acc_ref[...] = jnp.zeros_like(acc_ref)

    acc_ref[...] += jnp.dot(a_ref[...], b_ref[...],
                            preferred_element_type=jnp.float32)

    @pl.when(k == pl.num_programs(2) - 1)
    def _():
        out = acc_ref[...] * scale_ref[...] + bias_ref[...]
        if has_residual:
            out = out + res_ref[...].astype(jnp.float32)
        if relu:
            out = jnp.maximum(out, 0.0)
        o_ref[...] = out.astype(o_ref.dtype)


def _conv3x3_kernel(x0_ref, x1_ref, x2_ref, w_ref, scale_ref, bias_ref, o_ref, *,
                    relu):
    """Direct 3x3 stride-1 conv for one (batch, output-row, N-tile) grid point.

    x{0,1,2}_ref: (1, 1, Wp, C) padded input rows r, r+1, r+2.
    w_ref: (9, C, tn) per-tap weight matrices.  Accumulates the 9 taps in registers.
    """
    Wo = o_ref.shape[2]
    rows = (x0_ref, x1_ref, x2_ref)
    acc = None
    for di in range(3):
        for dj in range(3):
            a = rows[di][0, 0, dj:dj + Wo, :]                  # (Wo, C) bf16
            contrib = jnp.dot(a, w_ref[di * 3 + dj],
                              preferred_element_type=jnp.float32)
            acc = contrib if acc is None else acc + contrib
    out = acc * scale_ref[...] + bias_ref[...]
    if relu:
        out = jnp.maximum(out, 0.0)
    o_ref[0, 0] = out.astype(o_ref.dtype)


def _maxpool_kernel(x0_ref, x1_ref, x2_ref, o_ref):
    """3x3/stride-2 max pool for one (batch, output-row) grid point.

    Each x ref is one padded input row (1, 1, Wp, C); the stride-2 column windows are
    read directly with strided pl.ds (no (9, M, C) materialization)."""
    Wo = o_ref.shape[2]
    rows = (x0_ref, x1_ref, x2_ref)
    acc = None
    for di in range(3):
        for dj in range(3):
            tap = rows[di][0, 0, pl.ds(dj, Wo, 2), :]          # stride-2 window read
            acc = tap if acc is None else jnp.maximum(acc, tap)
    o_ref[0, 0] = acc


def _maxpool_stack_kernel(x_ref, o_ref):
    r = x_ref[0]
    for t in range(1, 9):
        r = jnp.maximum(r, x_ref[t])
    o_ref[...] = r


def _avgpool_kernel(x_ref, o_ref):
    o_ref[...] = jnp.mean(x_ref[...].astype(jnp.float32), axis=1)


def _head_kernel(x_ref, w1_ref, b1_ref, w2_ref, b2_ref, w3_ref, b3_ref, o_ref):
    # Linear -> Dropout(0.3) -> Linear -> Dropout(0.3) -> Linear, fused (dropout = id).
    h = jnp.dot(x_ref[...], w1_ref[...], preferred_element_type=jnp.float32) + b1_ref[...]
    h = jnp.dot(h, w2_ref[...], preferred_element_type=jnp.float32) + b2_ref[...]
    h = jnp.dot(h, w3_ref[...], preferred_element_type=jnp.float32) + b3_ref[...]
    o_ref[...] = h


# ----------------------------------------------------------------------------
# GEMM wrapper (1x1 convs, 7x7 stem, stride-2 3x3 im2col fallback)
# ----------------------------------------------------------------------------
def gemm(a, b_p, scale_p, bias_p, relu=False, residual=None, out_dtype=jnp.bfloat16):
    """a: (M, K).  b_p: (Kp, Np) pre-padded bf16 weight.  scale_p/bias_p: (1, Np) f32.
    Returns (M, Np) with the padded output channels exactly zero."""
    M, K = a.shape
    Kp, Np = b_p.shape
    Mp, tm = _pick_m_tiling(M)

    a = a.astype(jnp.bfloat16)
    if Mp != M or Kp != K:
        a = jnp.pad(a, ((0, Mp - M), (0, Kp - K)))
    if residual is not None:
        residual = residual.astype(jnp.bfloat16)
        if Mp != M:
            residual = jnp.pad(residual, ((0, Mp - M), (0, 0)))

    tn = _pick_tile(Np, 512)
    if Mp == tm and Np >= 256 and Np // tn < 2:
        # single M block: keep >=2 N blocks so the v7x megacore has a parallel axis
        tn = _pick_tile(Np, min(512, Np // 2))
    tk = _pick_tile(Kp, 1024)
    grid = (Mp // tm, Np // tn, Kp // tk)

    in_specs = [
        pl.BlockSpec((tm, tk), lambda i, j, k: (i, k)),
        pl.BlockSpec((tk, tn), lambda i, j, k: (k, j)),
        pl.BlockSpec((1, tn), lambda i, j, k: (0, j)),
        pl.BlockSpec((1, tn), lambda i, j, k: (0, j)),
    ]
    operands = [a, b_p, scale_p, bias_p]
    if residual is not None:
        in_specs.append(pl.BlockSpec((tm, tn), lambda i, j, k: (i, j)))
        operands.append(residual)

    out = pl.pallas_call(
        functools.partial(_gemm_kernel, relu=relu,
                          has_residual=residual is not None),
        out_shape=jax.ShapeDtypeStruct((Mp, Np), out_dtype),
        grid_spec=pltpu.PrefetchScalarGridSpec(
            num_scalar_prefetch=0,
            grid=grid,
            in_specs=in_specs,
            out_specs=pl.BlockSpec((tm, tn), lambda i, j, k: (i, j)),
            scratch_shapes=[pltpu.VMEM((tm, tn), jnp.float32)],
        ),
        compiler_params=pltpu.CompilerParams(
            dimension_semantics=("parallel", "parallel", "arbitrary"),
            vmem_limit_bytes=VMEM_LIMIT),
    )(*operands)
    return out if Mp == M else out[:M]


# ----------------------------------------------------------------------------
# Conv / pooling wrappers
# ----------------------------------------------------------------------------
def conv3x3_direct(x, p, relu=True):
    """3x3 stride-1 pad-1 conv + folded BN + ReLU, reading shifted rows of the
    zero-padded NHWC activation directly (no im2col materialization)."""
    B, H, W, C = x.shape
    Np = p["w"].shape[-1]
    xp = jnp.pad(x, ((0, 0), (1, 1), (1, 1), (0, 0)))
    Hp, Wp = H + 2, W + 2
    tn = _pick_tile(Np, 512)
    grid = (Np // tn, B, H)                 # N outermost: weight DMA'd ~once overall

    return pl.pallas_call(
        functools.partial(_conv3x3_kernel, relu=relu),
        out_shape=jax.ShapeDtypeStruct((B, H, W, Np), jnp.bfloat16),
        grid_spec=pltpu.PrefetchScalarGridSpec(
            num_scalar_prefetch=0,
            grid=grid,
            in_specs=[
                pl.BlockSpec((1, 1, Wp, C), lambda n, b, h: (b, h, 0, 0)),
                pl.BlockSpec((1, 1, Wp, C), lambda n, b, h: (b, h + 1, 0, 0)),
                pl.BlockSpec((1, 1, Wp, C), lambda n, b, h: (b, h + 2, 0, 0)),
                pl.BlockSpec((9, C, tn), lambda n, b, h: (0, 0, n)),
                pl.BlockSpec((1, tn), lambda n, b, h: (0, n)),
                pl.BlockSpec((1, tn), lambda n, b, h: (0, n)),
            ],
            out_specs=pl.BlockSpec((1, 1, W, tn), lambda n, b, h: (b, h, 0, n)),
        ),
        compiler_params=pltpu.CompilerParams(
            dimension_semantics=("parallel", "parallel", "arbitrary"),
            vmem_limit_bytes=VMEM_LIMIT),
    )(xp, xp, xp, p["w"], p["scale"], p["bias"])


def _im2col(x, k, stride, pad):
    """x: (B,H,W,C) -> (B*Ho*Wo, k*k*C) patches.
    Only used for the 7x7 stem conv and the three stride-2 3x3 convs.
    TODO(synk): stride-2 3x3 convs could also use a direct windowed kernel
    (strided pl.ds reads); im2col kept as the review-sanctioned fallback."""
    B, H, W, C = x.shape
    Ho = (H + 2 * pad - k) // stride + 1
    Wo = (W + 2 * pad - k) // stride + 1
    xp = jnp.pad(x, ((0, 0), (pad, pad), (pad, pad), (0, 0)))
    cols = []
    for di in range(k):
        for dj in range(k):
            v = jax.lax.slice(
                xp, (0, di, dj, 0),
                (B, di + stride * (Ho - 1) + 1, dj + stride * (Wo - 1) + 1, C),
                (1, stride, stride, 1))
            cols.append(v)
    patches = jnp.concatenate(cols, axis=-1)        # (B,Ho,Wo,k*k*C)
    return patches.reshape(B * Ho * Wo, k * k * C), Ho, Wo


def conv_bn(x, p, stride, pad, relu, residual=None):
    """Conv (k x k) + folded BatchNorm (+ optional fused residual add) (+ ReLU)."""
    B = x.shape[0]
    k = p["k"]
    Np = p["w"].shape[-1]

    if k == 3 and stride == 1 and p["layout"] == "tap":
        try:
            return conv3x3_direct(x, p, relu)
        except Exception:
            # Fallback if the direct windowed kernel fails to lower on this backend.
            a, Ho, Wo = _im2col(x, 3, 1, 1)
            out = gemm(a, p["w"].reshape(-1, Np), p["scale"], p["bias"], relu=relu)
            return out.reshape(B, Ho, Wo, Np)

    if k == 1:
        xs = x if stride == 1 else x[:, ::stride, ::stride, :]
        Ho, Wo = xs.shape[1], xs.shape[2]
        a = xs.reshape(B * Ho * Wo, xs.shape[3])
    else:
        a, Ho, Wo = _im2col(x, k, stride, pad)

    res2d = None
    if residual is not None:
        res2d = residual.reshape(B * Ho * Wo, residual.shape[-1])
    out = gemm(a, p["w"], p["scale"], p["bias"], relu=relu, residual=res2d,
               out_dtype=jnp.bfloat16)
    return out.reshape(B, Ho, Wo, Np)


def _maxpool_fallback(x):
    # Only used if the strided-window kernel fails to lower; costs ~9x activation HBM.
    B, H, W, C = x.shape
    Ho = (H + 2 - 3) // 2 + 1
    Wo = (W + 2 - 3) // 2 + 1
    xp = jnp.pad(x, ((0, 0), (1, 1), (1, 1), (0, 0)))
    views = []
    for di in range(3):
        for dj in range(3):
            v = jax.lax.slice(xp, (0, di, dj, 0),
                              (B, di + 2 * (Ho - 1) + 1, dj + 2 * (Wo - 1) + 1, C),
                              (1, 2, 2, 1))
            views.append(v.reshape(B * Ho * Wo, C))
    stacked = jnp.stack(views, axis=0)
    M = B * Ho * Wo
    Mp = _round_up(M, 8)
    if Mp != M:
        stacked = jnp.pad(stacked, ((0, 0), (0, Mp - M), (0, 0)))
    out = pl.pallas_call(
        _maxpool_stack_kernel,
        out_shape=jax.ShapeDtypeStruct((Mp, C), x.dtype),
        grid_spec=pltpu.PrefetchScalarGridSpec(
            num_scalar_prefetch=0, grid=(1,),
            in_specs=[pl.BlockSpec((9, Mp, C), lambda i: (0, 0, 0))],
            out_specs=pl.BlockSpec((Mp, C), lambda i: (0, 0))),
    )(stacked)
    return out[:M].reshape(B, Ho, Wo, C)


def maxpool_3x3_s2_p1(x):
    """3x3 / stride-2 / pad-1 max pool.  x is post-ReLU (>= 0), so zero spatial padding
    is equivalent to torch's implicit -inf padding."""
    B, H, W, C = x.shape
    Ho = (H + 2 - 3) // 2 + 1
    Wo = (W + 2 - 3) // 2 + 1
    xp = jnp.pad(x, ((0, 0), (1, 1), (1, 1), (0, 0)))
    Hp, Wp = H + 2, W + 2
    try:
        return pl.pallas_call(
            _maxpool_kernel,
            out_shape=jax.ShapeDtypeStruct((B, Ho, Wo, C), x.dtype),
            grid_spec=pltpu.PrefetchScalarGridSpec(
                num_scalar_prefetch=0,
                grid=(B, Ho),
                in_specs=[
                    pl.BlockSpec((1, 1, Wp, C), lambda b, i: (b, 2 * i, 0, 0)),
                    pl.BlockSpec((1, 1, Wp, C), lambda b, i: (b, 2 * i + 1, 0, 0)),
                    pl.BlockSpec((1, 1, Wp, C), lambda b, i: (b, 2 * i + 2, 0, 0)),
                ],
                out_specs=pl.BlockSpec((1, 1, Wo, C), lambda b, i: (b, i, 0, 0)),
            ),
            compiler_params=pltpu.CompilerParams(
                dimension_semantics=("parallel", "arbitrary")),
        )(xp, xp, xp)
    except Exception:
        return _maxpool_fallback(x)


def global_avg_pool(x):
    B, H, W, C = x.shape
    xr = x.reshape(B, H * W, C)
    tc = _pick_tile(C, 512)
    return pl.pallas_call(
        _avgpool_kernel,
        out_shape=jax.ShapeDtypeStruct((B, C), jnp.float32),
        grid_spec=pltpu.PrefetchScalarGridSpec(
            num_scalar_prefetch=0,
            grid=(C // tc,),
            in_specs=[pl.BlockSpec((B, H * W, tc), lambda j: (0, 0, j))],
            out_specs=pl.BlockSpec((B, tc), lambda j: (0, j)),
        ),
        compiler_params=pltpu.CompilerParams(dimension_semantics=("parallel",)),
    )(xr)


def mlp_head(feat, fc1, fc2, fc3):
    """Fused Linear->Dropout->Linear->Dropout->Linear head (dropouts = identity)."""
    B = feat.shape[0]
    Np3 = fc3["w"].shape[1]
    out = pl.pallas_call(
        _head_kernel,
        out_shape=jax.ShapeDtypeStruct((B, Np3), jnp.float32),
    )(feat, fc1["w"], fc1["b"], fc2["w"], fc2["b"], fc3["w"], fc3["b"])
    return out[:, :fc3["n"]]


# ----------------------------------------------------------------------------
# Parameter construction (deterministic, synthetic, pre-padded for the kernels)
# ----------------------------------------------------------------------------
def _fold_bn(key, cout):
    k1, k2, k3, k4 = jax.random.split(key, 4)
    gamma = 1.0 + 0.1 * jax.random.normal(k1, (cout,), jnp.float32)
    beta = 0.1 * jax.random.normal(k2, (cout,), jnp.float32)
    mean = 0.1 * jax.random.normal(k3, (cout,), jnp.float32)
    var = 1.0 + 0.1 * jax.random.uniform(k4, (cout,), jnp.float32)
    scale = gamma / jnp.sqrt(var + 1e-5)
    bias = beta - mean * scale
    return scale, bias


def _conv_bn_params(key, cin, cout, k, *, cin_pad=None, layout="gemm"):
    """cin_pad: padded (128-multiple) input-channel count actually present in the
    activation (channels are kept padded between layers).
    layout 'gemm': weight stored as a (Kp, Np) GEMM matrix (1x1 convs, 7x7 stem,
                   stride-2 3x3 im2col fallback).
    layout 'tap' : weight stored as (9, Cp, Np) per-tap matrices for the direct
                   3x3 stride-1 kernel."""
    kw, kbn = jax.random.split(key)
    fan_in = k * k * cin
    w = jax.random.normal(kw, (k, k, cin, cout), jnp.float32) * math.sqrt(2.0 / fan_in)
    scale, bias = _fold_bn(kbn, cout)
    cp = cin if cin_pad is None else cin_pad
    Np = _round_up(cout, 128)
    s2 = jnp.zeros((1, Np), jnp.float32).at[0, :cout].set(scale)
    b2 = jnp.zeros((1, Np), jnp.float32).at[0, :cout].set(bias)

    if layout == "tap":
        assert k == 3
        w2 = jnp.zeros((9, cp, Np), jnp.bfloat16).at[:, :cin, :cout].set(
            w.reshape(9, cin, cout).astype(jnp.bfloat16))
        return {"k": k, "layout": "tap", "w": w2, "scale": s2, "bias": b2}

    K = k * k * cp
    Kp = _round_up(K, 128)
    wfull = jnp.zeros((k, k, cp, cout), jnp.float32).at[:, :, :cin, :].set(w)
    w2 = jnp.zeros((Kp, Np), jnp.bfloat16).at[:K, :cout].set(
        wfull.reshape(K, cout).astype(jnp.bfloat16))
    return {"k": k, "layout": "gemm", "w": w2, "scale": s2, "bias": b2}


def _linear_params(key, cin, cout, *, kp=None, npad=None):
    kw, kb = jax.random.split(key)
    bound = 1.0 / math.sqrt(cin)
    w = jax.random.uniform(kw, (cin, cout), jnp.float32, -bound, bound)
    b = jax.random.uniform(kb, (cout,), jnp.float32, -bound, bound)
    Kp = cin if kp is None else kp
    Np = cout if npad is None else npad
    w2 = jnp.zeros((Kp, Np), jnp.float32).at[:cin, :cout].set(w)
    b2 = jnp.zeros((1, Np), jnp.float32).at[0, :cout].set(b)
    return {"w": w2, "b": b2, "n": cout}


def make_params(key, num_classes):
    keys = iter(jax.random.split(key, 256))
    params = {"conv1": _conv_bn_params(next(keys), 3, 64, 7, layout="gemm")}
    layers = []
    in_ch = 64
    for (width, blocks, stride) in [(64, 3, 1), (128, 4, 2), (256, 6, 2), (512, 3, 2)]:
        blks = []
        for bi in range(blocks):
            s = stride if bi == 0 else 1
            out_ch = width * 4
            in_p = _round_up(in_ch, 128)
            w_p = _round_up(width, 128)
            blk = {
                "conv1": _conv_bn_params(next(keys), in_ch, width, 1, cin_pad=in_p),
                "conv2": _conv_bn_params(next(keys), width, width, 3, cin_pad=w_p,
                                         layout="gemm" if s == 2 else "tap"),
                "conv3": _conv_bn_params(next(keys), width, out_ch, 1, cin_pad=w_p),
                "stride": s,
            }
            if bi == 0:
                blk["downsample"] = _conv_bn_params(next(keys), in_ch, out_ch, 1,
                                                    cin_pad=in_p)
            blks.append(blk)
            in_ch = out_ch
        layers.append(blks)
    params["layers"] = layers
    # head: Linear(2048 + 1, 512) -> Dropout -> Linear(512, 128) -> Dropout -> Linear(128, nc)
    params["fc1"] = _linear_params(next(keys), 2048 + 1, 512, kp=_round_up(2049, 128))
    params["fc2"] = _linear_params(next(keys), 512, 128)
    params["fc3"] = _linear_params(next(keys), 128, num_classes,
                                   npad=_round_up(num_classes, 128))
    return params


# ----------------------------------------------------------------------------
# Forward pass (mirrors ResNet.forward; eval-mode semantics)
# ----------------------------------------------------------------------------
def resnet_forward(params, x_nhwc, O):
    # x_nhwc: (B, H, W, 3) == the PyTorch `x` before its NHWC->NCHW transposes.
    x = x_nhwc.astype(jnp.bfloat16)         # bf16 activations through the backbone
    out = conv_bn(x, params["conv1"], stride=2, pad=3, relu=True)
    out = maxpool_3x3_s2_p1(out)
    for blks in params["layers"]:
        for blk in blks:
            o = conv_bn(out, blk["conv1"], stride=1, pad=0, relu=True)
            o = conv_bn(o, blk["conv2"], stride=blk["stride"], pad=1, relu=True)
            if "downsample" in blk:
                identity = conv_bn(out, blk["downsample"], stride=blk["stride"],
                                   pad=0, relu=False)
            else:
                identity = out
            # residual add + ReLU fused into the conv3 GEMM epilogue
            out = conv_bn(o, blk["conv3"], stride=1, pad=0, relu=True,
                          residual=identity)

    feat = global_avg_pool(out)                     # (B, 2048) f32; net.fc = Dropout(0.0) = identity
    feat = jnp.concatenate([feat, O.astype(jnp.float32)], axis=1)    # (B, 2049)
    Kp1 = params["fc1"]["w"].shape[0]
    if Kp1 != feat.shape[1]:
        feat = jnp.pad(feat, ((0, 0), (0, Kp1 - feat.shape[1])))
    # TODO(synk): dropouts are identity here (inference semantics); no train-mode RNG masking.
    return mlp_head(feat, params["fc1"], params["fc2"], params["fc3"])


# ----------------------------------------------------------------------------
if __name__ == "__main__":
    num_classes = 10
    key = jax.random.PRNGKey(0)
    kx, ko, kp = jax.random.split(key, 3)

    x = jax.random.normal(kx, (2, 16, 16, 3), jnp.float32)   # NHWC input
    O = jax.random.normal(ko, (2, 1), jnp.float32)
    params = make_params(kp, num_classes)

    out = resnet_forward(params, x, O)
    out = jax.block_until_ready(out)
    assert out.shape == (2, num_classes), out.shape
    assert bool(jnp.all(jnp.isfinite(out)))
    print("KERNEL_OK")
</pallas_src>

<mosaic_0001>
module attributes {stable_mosaic.version = 11 : i64} {
  func.func @_gemm_kernel(%arg0: i32, %arg1: i32, %arg2: i32, %arg3: memref<128x256xbf16, #tpu.memory_space<vmem>>, %arg4: memref<256x128xbf16, #tpu.memory_space<vmem>>, %arg5: memref<1x128xf32, #tpu.memory_space<vmem>>, %arg6: memref<1x128xf32, #tpu.memory_space<vmem>>, %arg7: memref<128x128xbf16, #tpu.memory_space<vmem>>, %arg8: memref<128x128xf32, #tpu.memory_space<vmem>>) attributes {dimension_semantics = [#tpu.dimension_semantics<parallel>, #tpu.dimension_semantics<parallel>, #tpu.dimension_semantics<arbitrary>], iteration_bounds = array<i64: 1, 1, 1>, scalar_prefetch = 0 : i64, scratch_operands = 1 : i64, tpu.core_type = #tpu.core_type<tc>, window_params = [{transform_indices = @transform_0, window_bounds = array<i64: 128, 256>}, {transform_indices = @transform_1, window_bounds = array<i64: 256, 128>}, {transform_indices = @transform_2, window_bounds = array<i64: 1, 128>}, {transform_indices = @transform_3, window_bounds = array<i64: 1, 128>}, {transform_indices = @transform_4, window_bounds = array<i64: 128, 128>}]} {
    %c0_i32 = arith.constant 0 : i32
    %0 = arith.cmpi eq, %arg2, %c0_i32 : i32
    %1 = arith.extui %0 : i1 to i32
    %c0_i32_0 = arith.constant 0 : i32
    %2 = arith.cmpi ne, %1, %c0_i32_0 : i32
    scf.if %2 {
      %cst_10 = arith.constant 0.000000e+00 : f32
      %12 = vector.broadcast %cst_10 : f32 to vector<128x128xf32>
      %c0_11 = arith.constant 0 : index
      %c0_12 = arith.constant 0 : index
      %13 = vector.load %arg8[%c0_11, %c0_12] : memref<128x128xf32, #tpu.memory_space<vmem>>, vector<128x128xf32>
      tpu.vector_store %arg8[%c0_11, %c0_12], %12 {strides = array<i32>} : memref<128x128xf32, #tpu.memory_space<vmem>>, vector<128x128xf32>,
    } else {
    }
    %c0 = arith.constant 0 : index
    %c0_1 = arith.constant 0 : index
    %3 = vector.load %arg8[%c0, %c0_1] : memref<128x128xf32, #tpu.memory_space<vmem>>, vector<128x128xf32>
    %c0_2 = arith.constant 0 : index
    %c0_3 = arith.constant 0 : index
    %4 = vector.load %arg3[%c0_2, %c0_3] : memref<128x256xbf16, #tpu.memory_space<vmem>>, vector<128x256xbf16>
    %c0_4 = arith.constant 0 : index
    %c0_5 = arith.constant 0 : index
    %5 = vector.load %arg4[%c0_4, %c0_5] : memref<256x128xbf16, #tpu.memory_space<vmem>>, vector<256x128xbf16>
    %cst = arith.constant dense<0.000000e+00> : vector<128x128xf32>
    %6 = tpu.matmul %4, %5, %cst {dimension_numbers = #tpu.dot_dimension_numbers<[1], [0], [0], [1], [0, 0, 1, 1], [], []>} : vector<128x256xbf16>, vector<256x128xbf16>, vector<128x128xf32> -> vector<128x128xf32>
    %7 = arith.addf %3, %6 : vector<128x128xf32>
    %c0_6 = arith.constant 0 : index
    %c0_7 = arith.constant 0 : index
    %8 = vector.load %arg8[%c0_6, %c0_7] : memref<128x128xf32, #tpu.memory_space<vmem>>, vector<128x128xf32>
    tpu.vector_store %arg8[%c0_6, %c0_7], %7 {strides = array<i32>} : memref<128x128xf32, #tpu.memory_space<vmem>>, vector<128x128xf32>,
    %c0_i32_8 = arith.constant 0 : i32
    %9 = arith.cmpi eq, %arg2, %c0_i32_8 : i32
    %10 = arith.extui %9 : i1 to i32
    %c0_i32_9 = arith.constant 0 : i32
    %11 = arith.cmpi ne, %10, %c0_i32_9 : i32
    scf.if %11 {
      %c0_10 = arith.constant 0 : index
      %c0_11 = arith.constant 0 : index
      %12 = vector.load %arg8[%c0_10, %c0_11] : memref<128x128xf32, #tpu.memory_space<vmem>>, vector<128x128xf32>
      %c0_12 = arith.constant 0 : index
      %c0_13 = arith.constant 0 : index
      %13 = vector.load %arg5[%c0_12, %c0_13] : memref<1x128xf32, #tpu.memory_space<vmem>>, vector<1x128xf32>
      %14 = vector.broadcast %13 : vector<1x128xf32> to vector<128x128xf32>
      %15 = arith.mulf %12, %14 : vector<128x128xf32>
      %c0_14 = arith.constant 0 : index
      %c0_15 = arith.constant 0 : index
      %16 = vector.load %arg6[%c0_14, %c0_15] : memref<1x128xf32, #tpu.memory_space<vmem>>, vector<1x128xf32>
      %17 = vector.broadcast %16 : vector<1x128xf32> to vector<128x128xf32>
      %18 = arith.addf %15, %17 : vector<128x128xf32>
      %cst_16 = arith.constant 0.000000e+00 : f32
      %19 = vector.broadcast %cst_16 : f32 to vector<128x128xf32>
      %20 = arith.maximumf %18, %19 : vector<128x128xf32>
      %21 = arith.truncf %20 : vector<128x128xf32> to vector<128x128xbf16>
      %c0_17 = arith.constant 0 : index
      %c0_18 = arith.constant 0 : index
      %22 = vector.load %arg7[%c0_17, %c0_18] : memref<128x128xbf16, #tpu.memory_space<vmem>>, vector<128x128xbf16>
      tpu.vector_store %arg7[%c0_17, %c0_18], %21 {strides = array<i32>} : memref<128x128xbf16, #tpu.memory_space<vmem>>, vector<128x128xbf16>,
    } else {
    }
    return
  }
  func.func @transform_0(%arg0: i32, %arg1: i32, %arg2: i32) -> (i32, i32) {
    %c0_i32 = arith.constant 0 : i32
    return %arg0, %arg2 : i32, i32
  }
  func.func @transform_1(%arg0: i32, %arg1: i32, %arg2: i32) -> (i32, i32) {
    %c0_i32 = arith.constant 0 : i32
    return %arg2, %arg1 : i32, i32
  }
  func.func @transform_2(%arg0: i32, %arg1: i32, %arg2: i32) -> (i32, i32) {
    %c0_i32 = arith.constant 0 : i32
    %c0_i32_0 = arith.constant 0 : i32
    return %c0_i32, %arg1 : i32, i32
  }
  func.func @transform_3(%arg0: i32, %arg1: i32, %arg2: i32) -> (i32, i32) {
    %c0_i32 = arith.constant 0 : i32
    %c0_i32_0 = arith.constant 0 : i32
    return %c0_i32, %arg1 : i32, i32
  }
  func.func @transform_4(%arg0: i32, %arg1: i32, %arg2: i32) -> (i32, i32) {
    %c0_i32 = arith.constant 0 : i32
    return %arg0, %arg1 : i32, i32
  }
}

</mosaic_0001>

<bundles_post_ra>
// kernel: tpu_custom_call.1
= control target key start
LH: loop header
LB: loop body
LE: loop exit
PB: predicated region body
PF: predicated region fallthrough
CT: control target
= control target key end

     0   :  { %9 = vsyncpa [#allocation4], 0  ;;  %s1010_s0 = inlined_call_operand.hbm [shape: bf16[128,256], index: 0, kind: input, shape index: {}]   ;;  %s1011_s1 = inlined_call_operand.hbm [shape: bf16[256,128], index: 1, kind: input, shape index: {}]   ;;  %s1012_s2 = inlined_call_operand.vmem [shape: f32[1,128], index: 2, kind: input, shape index: {}]   ;;  %s1013_s3 = inlined_call_operand.vmem [shape: f32[1,128], index: 3, kind: input, shape index: {}]   ;;  %s1014_s4 = inlined_call_operand.hbm [shape: bf16[128,128], index: 4, kind: output, shape index: {}]  }
   0x1   :  { %10 = vsyncpa [#allocation7], 0 }
   0x2   :  { %11 = vsyncpa [#allocation5], 0  ;;  %s921_s15 = smov [#allocation3]  }
   0x3   :  { %s17_s16 = sshll.u32 %s921_s15, 4  ;;  %s18_s16 = int_to_ptr.vmem [resolvable:$true] %s17_s16 }
   0x4   :  { %s863_s17 = scalar_lea.vmem %s18_s16, 2048  ;;  %p868_p1 = scmp.lt.s32.totalorder %s18_s16, %s18_s16 }
   0x5   :  { %p864_p0 = scmp.ne.s32.totalorder %s18_s16, %s863_s17  ;;  %p869_p2 = scmp.lt.s32.totalorder %s863_s17, %s863_s17 }
   0x7   :  { %p870_p3 = por %p869_p2, %p868_p1 }
   0x9   :  { %p871_p4 = pnand %p870_p3, %p864_p0 }
   0xb   :  { %874 = shalt.err (!%p871_p4)
}
   0xc   :  { %s922_s18 = smov 128   ;;  %s923_s19 = smov 8  }
   0xd   :  { %23 = dma.hbm_to_vmem [thread:$0]  %s1010_s0, 2048, %s18_s16, [#allocation4], %s922_s18, %s922_s18, %s923_s19  }
   0xe   :  { %s924_s22 = smov [#allocation6]  }
   0xf   :  { %s29_s23 = sshll.u32 %s924_s22, 4  ;;  %s30_s23 = int_to_ptr.vmem [resolvable:$true] %s29_s23 }
  0x10   :  { %s883_s24 = scalar_lea.vmem %s30_s23, 2048  ;;  %p888_p6 = scmp.lt.s32.totalorder %s30_s23, %s30_s23 }
  0x11   :  { %p884_p5 = scmp.ne.s32.totalorder %s30_s23, %s883_s24  ;;  %p889_p7 = scmp.lt.s32.totalorder %s883_s24, %s883_s24 }
  0x13   :  { %p890_p8 = por %p889_p7, %p888_p6 }
  0x15   :  { %p891_p9 = pnand %p890_p8, %p884_p5 }
  0x17   :  { %894 = shalt.err (!%p891_p9)
}
  0x18   :  { %s925_s25 = smov 64   ;;  %s926_s26 = smov 4  }
  0x19   :  { %35 = dma.hbm_to_vmem [thread:$0]  %s1011_s1, 2048, %s30_s23, [#allocation7], %s925_s25, %s925_s25, %s926_s26  }
  0x1a   :  { %915 = dma.done.wait [#allocation4], 2048  }
  0x1b   :  { %916 = vsyncadd [#allocation4], 4294965248 }
  0x1c   :  { %917 = dma.done.wait [#allocation7], 2048  }
  0x1d   :  { %918 = vsyncadd [#allocation7], 4294965248  ;;  %v815_v0 = vld [vmem:[#allocation6 + $0x78] sm:$0xff]   ;;  %v817_v2 = vld [vmem:[#allocation6 + $0x70] sm:$0xff]  }
  0x1e   :  { %v816_v1 = vld [vmem:[#allocation6 + $0x38] sm:$0xff]   ;;  %728 = vmatprep.subr.bf16.mxu0 %v815_v0  ;;  %792 = vmatprep.subr.bf16.mxu1 %v815_v0  ;;  %v818_v3 = vld [vmem:[#allocation6 + $0x30] sm:$0xff]   ;;  %v819_v4 = vld [vmem:[#allocation6 + $0x68] sm:$0xff]  }
  0x1f   :  { %729 = vmatpush3.bf16.msra.mxu0 %v816_v1  ;;  %800 = vmatpush3.bf16.msra.mxu1 %v816_v1  ;;  %v820_v5 = vld [vmem:[#allocation6 + $0x28] sm:$0xff]   ;;  %v821_v6 = vld [vmem:[#allocation6 + $0x60] sm:$0xff]   ;;  %v823_v8 = vld [vmem:[#allocation6 + $0x58] sm:$0xff]  }
  0x20   :  { %730 = vmatprep.subr.bf16.mxu0 %v817_v2  ;;  %793 = vmatprep.subr.bf16.mxu1 %v817_v2  ;;  %v822_v7 = vld [vmem:[#allocation6 + $0x20] sm:$0xff]   ;;  %v824_v9 = vld [vmem:[#allocation6 + $0x18] sm:$0xff]   ;;  %v825_v10 = vld [vmem:[#allocation6 + $0x50] sm:$0xff]  }
  0x21   :  { %v833_v11 = vld [vmem:[#allocation3 + $0x4] ss:$8 sps:$4 sm:$0xff]   ;;  %v826_v13 = vld [vmem:[#allocation6 + $0x10] sm:$0xff]   ;;  %v831_v18 = vld [vmem:[#allocation3] ss:$8 sps:$4 sm:$0xff]  }
  0x22   :  { %v836_v12 = vld [vmem:[#allocation3 + $0x44] ss:$8 sps:$4 sm:$0xff]   ;;  %339 = vmatprep.mubr.bf16.mxu0 %v833_v11  ;;  %v834_v19 = vld [vmem:[#allocation3 + $0x40] ss:$8 sps:$4 sm:$0xff]   ;;  %v837_v20 = vld [vmem:[#allocation3 + $0x14] ss:$8 sps:$4 sm:$0xff]  }
  0x23   :  { %731 = vmatpush3.bf16.msra.mxu0 %v818_v3  ;;  %801 = vmatpush3.bf16.msra.mxu1 %v818_v3  ;;  %v827_v14 = vld [vmem:[#allocation6 + $0x48] sm:$0xff]   ;;  %v829_v16 = vld [vmem:[#allocation6 + $0x40] sm:$0xff]   ;;  %v839_v21 = vld [vmem:[#allocation3 + $0x54] ss:$8 sps:$4 sm:$0xff]  }
  0x24   :  { %732 = vmatprep.subr.bf16.mxu0 %v819_v4  ;;  %794 = vmatprep.subr.bf16.mxu1 %v819_v4  ;;  %v828_v15 = vld [vmem:[#allocation6 + $0x8] sm:$0xff]   ;;  %v830_v17 = vld [vmem:[#allocation6] sm:$0xff]   ;;  %v841_v22 = vld [vmem:[#allocation3 + $0x10] ss:$8 sps:$4 sm:$0xff]  }
  0x25   :  { %371 = vmatprep.mubr.bf16.mxu1 %v836_v12  ;;  %v842_v23 = vld [vmem:[#allocation3 + $0x50] ss:$8 sps:$4 sm:$0xff]   ;;  %v843_v24 = vld [vmem:[#allocation3 + $0x24] ss:$8 sps:$4 sm:$0xff]   ;;  %v847_v26 = vld [vmem:[#allocation3 + $0x20] ss:$8 sps:$4 sm:$0xff]  }
  0x26   :  { %v845_v25 = vld [vmem:[#allocation3 + $0x64] ss:$8 sps:$4 sm:$0xff]   ;;  %v848_v27 = vld [vmem:[#allocation3 + $0x60] ss:$8 sps:$4 sm:$0xff]   ;;  %v849_v28 = vld [vmem:[#allocation3 + $0x34] ss:$8 sps:$4 sm:$0xff]  }
  0x27   :  { %733 = vmatpush3.bf16.msra.mxu0 %v820_v5  ;;  %802 = vmatpush3.bf16.msra.mxu1 %v820_v5  ;;  %v851_v29 = vld [vmem:[#allocation3 + $0x74] ss:$8 sps:$4 sm:$0xff]   ;;  %v853_v30 = vld [vmem:[#allocation3 + $0x30] ss:$8 sps:$4 sm:$0xff]   ;;  %v965_v35 = vld [vmem:[%s1012_s2] ss:$0 sm:$0xff] }
  0x28   :  { %734 = vmatprep.subr.bf16.mxu0 %v821_v6  ;;  %795 = vmatprep.subr.bf16.mxu1 %v821_v6  ;;  %v854_v31 = vld [vmem:[#allocation3 + $0x70] ss:$8 sps:$4 sm:$0xff]   ;;  %v972_v43 = vld [vmem:[%s1013_s3] ss:$0 sm:$0xff]  ;;  %s927_s2 = smov [#allocation8]  }
  0x29   :  { %s602_s3 = sshll.u32 %s927_s2, 4  ;;  %s603_s3 = int_to_ptr.vmem [resolvable:$true] %s602_s3 }
  0x2a   :  { %s895_s5 = scalar_lea.vmem %s603_s3, 1024  ;;  %p900_p11 = scmp.lt.s32.totalorder %s603_s3, %s603_s3 }
  0x2b   :  { %735 = vmatpush3.bf16.msra.mxu0 %v822_v7  ;;  %803 = vmatpush3.bf16.msra.mxu1 %v822_v7  ;;  %p896_p10 = scmp.ne.s32.totalorder %s603_s3, %s895_s5  ;;  %p901_p12 = scmp.lt.s32.totalorder %s895_s5, %s895_s5 }
  0x2c   :  { %736 = vmatprep.subr.bf16.mxu0 %v823_v8  ;;  %796 = vmatprep.subr.bf16.mxu1 %v823_v8 }
  0x2d   :  { %p902_p13 = por %p901_p12, %p900_p11 }
  0x2f   :  { %737 = vmatpush3.bf16.msra.mxu0 %v824_v9  ;;  %804 = vmatpush3.bf16.msra.mxu1 %v824_v9  ;;  %p903_p0 = pnand %p902_p13, %p896_p10 }
  0x30   :  { %738 = vmatprep.subr.bf16.mxu0 %v825_v10  ;;  %797 = vmatprep.subr.bf16.mxu1 %v825_v10 }
  0x33   :  { %739 = vmatpush3.bf16.msra.mxu0 %v826_v13  ;;  %805 = vmatpush3.bf16.msra.mxu1 %v826_v13 }
  0x34   :  { %740 = vmatprep.subr.bf16.mxu0 %v827_v14  ;;  %798 = vmatprep.subr.bf16.mxu1 %v827_v14 }
  0x37   :  { %741 = vmatpush3.bf16.msra.mxu0 %v828_v15  ;;  %806 = vmatpush3.bf16.msra.mxu1 %v828_v15 }
  0x38   :  { %742 = vmatprep.subr.bf16.mxu0 %v829_v16  ;;  %799 = vmatprep.subr.bf16.mxu1 %v829_v16 }
  0x3b   :  { %743 = vmatpush3.bf16.msra.mxu0 %v830_v17  ;;  %807 = vmatpush3.bf16.msra.mxu1 %v830_v17 }
  0x3e   :  { %340 = vmatmul.mubr.bf16.vlgmr.msra.gmra.mxu0 %v831_v18  ;;  %372 = vmatmul.mubr.bf16.vlgmr.msra.gmra.mxu1 %v834_v19 }
  0x3f   :  { %347 = vmatprep.mubr.bf16.mxu0 %v837_v20  ;;  %379 = vmatprep.mubr.bf16.mxu1 %v839_v21 }
  0x46   :  { %348 = vmatmul.mubr.bf16.gmra.mxu0 %v841_v22  ;;  %380 = vmatmul.mubr.bf16.gmra.mxu1 %v842_v23 }
  0x47   :  { %355 = vmatprep.mubr.bf16.mxu0 %v843_v24  ;;  %387 = vmatprep.mubr.bf16.mxu1 %v845_v25 }
  0x4e   :  { %356 = vmatmul.mubr.bf16.gmra.mxu0 %v847_v26  ;;  %388 = vmatmul.mubr.bf16.gmra.mxu1 %v848_v27 }
  0x4f   :  { %363 = vmatprep.mubr.bf16.mxu0 %v849_v28  ;;  %395 = vmatprep.mubr.bf16.mxu1 %v851_v29 }
  0x56   :  { %364 = vmatmul.mubr.bf16.gmra.mxu0 %v853_v30  ;;  %396 = vmatmul.mubr.bf16.gmra.mxu1 %v854_v31 }
  0xfe   :  { %v744_v32 = vpop.f32.mrf.mxu0  ;;  %v768_v33 = vpop.f32.mrf.mxu1 }
 0x100   :  { %v745_v34 = vpop.f32.mrf.mxu0  ;;  %v769_v36 = vpop.f32.mrf.mxu1 }
 0x101   :  { %v746_v37 = vadd.f32 %v745_v34, %v744_v32  ;;  %v770_v38 = vadd.f32 %v769_v36, %v768_v33 }
 0x102   :  { %v747_v39 = vpop.f32.mrf.mxu0  ;;  %v771_v40 = vpop.f32.mrf.mxu1 }
 0x103   :  { %v462_v41 = vmul.f32 %v746_v37, %v965_v35  ;;  %v470_v42 = vmul.f32 %v770_v38, %v965_v35 }
 0x104   :  { %v748_v44 = vpop.f32.mrf.mxu0  ;;  %v772_v45 = vpop.f32.mrf.mxu1 }
 0x105   :  { %v749_v46 = vadd.f32 %v748_v44, %v747_v39  ;;  %v773_v47 = vadd.f32 %v772_v45, %v771_v40  ;;  %v485_v50 = vadd.f32 %v972_v43, %v462_v41  ;;  %v493_v51 = vadd.f32 %v972_v43, %v470_v42 }
 0x106   :  { %v750_v48 = vpop.f32.mrf.mxu0  ;;  %v774_v49 = vpop.f32.mrf.mxu1 }
 0x107   :  { %v463_v52 = vmul.f32 %v749_v46, %v965_v35  ;;  %v471_v53 = vmul.f32 %v773_v47, %v965_v35  ;;  %v501_v62 = vmax.f32 %v485_v50, 0.0  ;;  %v509_v63 = vmax.f32 %v493_v51, 0.0 }
 0x108   :  { %v751_v54 = vpop.f32.mrf.mxu0  ;;  %v775_v55 = vpop.f32.mrf.mxu1 }
 0x109   :  { %v486_v56 = vadd.f32 %v972_v43, %v463_v52  ;;  %v494_v57 = vadd.f32 %v972_v43, %v471_v53  ;;  %v752_v58 = vadd.f32 %v751_v54, %v750_v48  ;;  %v776_v59 = vadd.f32 %v775_v55, %v774_v49 }
 0x10a   :  { %v753_v60 = vpop.f32.mrf.mxu0  ;;  %v777_v61 = vpop.f32.mrf.mxu1 }
 0x10b   :  { %v502_v0 = vmax.f32 %v486_v56, 0.0  ;;  %v510_v1 = vmax.f32 %v494_v57, 0.0  ;;  %v464_v2 = vmul.f32 %v752_v58, %v965_v35  ;;  %v472_v3 = vmul.f32 %v776_v59, %v965_v35 }
 0x10c   :  { %v754_v4 = vpop.f32.mrf.mxu0  ;;  %v778_v5 = vpop.f32.mrf.mxu1 }
 0x10d   :  { %v684_v6 = vpack.c.bf16 %v502_v0, %v501_v62  ;;  %v704_v7 = vpack.c.bf16 %v510_v1, %v509_v63  ;;  %v755_v8 = vadd.f32 %v754_v4, %v753_v60  ;;  %v779_v9 = vadd.f32 %v778_v5, %v777_v61 }
 0x10e   :  { %v756_v10 = vpop.f32.mrf.mxu0  ;;  %v780_v11 = vpop.f32.mrf.mxu1  ;;  %v487_v12 = vadd.f32 %v972_v43, %v464_v2  ;;  %v495_v13 = vadd.f32 %v972_v43, %v472_v3 }
 0x10f   :  { %685 = vst [vmem:[#allocation8] sm:$0xff] %v684_v6   ;;  %724 = vst [vmem:[#allocation8 + $0x20] sm:$0xff] %v704_v7   ;;  %v465_v14 = vmul.f32 %v755_v8, %v965_v35  ;;  %v473_v15 = vmul.f32 %v779_v9, %v965_v35 }
 0x110   :  { %v757_v16 = vpop.f32.mrf.mxu0  ;;  %v781_v17 = vpop.f32.mrf.mxu1  ;;  %v503_v26 = vmax.f32 %v487_v12, 0.0  ;;  %v511_v27 = vmax.f32 %v495_v13, 0.0 }
 0x111   :  { %v758_v18 = vadd.f32 %v757_v16, %v756_v10  ;;  %v782_v19 = vadd.f32 %v781_v17, %v780_v11  ;;  %v488_v20 = vadd.f32 %v972_v43, %v465_v14  ;;  %v496_v21 = vadd.f32 %v972_v43, %v473_v15 }
 0x112   :  { %v759_v22 = vpop.f32.mrf.mxu0  ;;  %v783_v23 = vpop.f32.mrf.mxu1 }
 0x113   :  { %v466_v24 = vmul.f32 %v758_v18, %v965_v35  ;;  %v474_v25 = vmul.f32 %v782_v19, %v965_v35  ;;  %v504_v28 = vmax.f32 %v488_v20, 0.0  ;;  %v512_v29 = vmax.f32 %v496_v21, 0.0 }
 0x114   :  { %v760_v30 = vpop.f32.mrf.mxu0  ;;  %v784_v31 = vpop.f32.mrf.mxu1 }
 0x115   :  { %v761_v32 = vadd.f32 %v760_v30, %v759_v22  ;;  %v785_v33 = vadd.f32 %v784_v31, %v783_v23  ;;  %v689_v34 = vpack.c.bf16 %v504_v28, %v503_v26  ;;  %v709_v36 = vpack.c.bf16 %v512_v29, %v511_v27 }
 0x116   :  { %v762_v37 = vpop.f32.mrf.mxu0  ;;  %v786_v38 = vpop.f32.mrf.mxu1  ;;  %v489_v39 = vadd.f32 %v972_v43, %v466_v24  ;;  %v497_v40 = vadd.f32 %v972_v43, %v474_v25 }
 0x117   :  { %v467_v41 = vmul.f32 %v761_v32, %v965_v35  ;;  %v475_v42 = vmul.f32 %v785_v33, %v965_v35  ;;  %721 = vst [vmem:[#allocation8 + $0x8] sm:$0xff] %v689_v34   ;;  %725 = vst [vmem:[#allocation8 + $0x28] sm:$0xff] %v709_v36  }
 0x118   :  { %v763_v44 = vpop.f32.mrf.mxu0  ;;  %v787_v45 = vpop.f32.mrf.mxu1  ;;  %v505_v52 = vmax.f32 %v489_v39, 0.0  ;;  %v513_v53 = vmax.f32 %v497_v40, 0.0 }
 0x119   :  { %v490_v46 = vadd.f32 %v972_v43, %v467_v41  ;;  %v498_v47 = vadd.f32 %v972_v43, %v475_v42  ;;  %v764_v48 = vadd.f32 %v763_v44, %v762_v37  ;;  %v788_v49 = vadd.f32 %v787_v45, %v786_v38 }
 0x11a   :  { %v765_v50 = vpop.f32.mrf.mxu0  ;;  %v789_v51 = vpop.f32.mrf.mxu1 }
 0x11b   :  { %v506_v54 = vmax.f32 %v490_v46, 0.0  ;;  %v514_v55 = vmax.f32 %v498_v47, 0.0  ;;  %v468_v56 = vmul.f32 %v764_v48, %v965_v35  ;;  %v476_v57 = vmul.f32 %v788_v49, %v965_v35 }
 0x11c   :  { %v766_v58 = vpop.f32.mrf.mxu0  ;;  %v790_v59 = vpop.f32.mrf.mxu1 }
 0x11d   :  { %v694_v60 = vpack.c.bf16 %v506_v54, %v505_v52  ;;  %v714_v61 = vpack.c.bf16 %v514_v55, %v513_v53  ;;  %v767_v62 = vadd.f32 %v766_v58, %v765_v50  ;;  %v791_v63 = vadd.f32 %v790_v59, %v789_v51 }
 0x11e   :  { %v491_v0 = vadd.f32 %v972_v43, %v468_v56  ;;  %v499_v1 = vadd.f32 %v972_v43, %v476_v57 }
 0x11f   :  { %722 = vst [vmem:[#allocation8 + $0x10] sm:$0xff] %v694_v60   ;;  %726 = vst [vmem:[#allocation8 + $0x30] sm:$0xff] %v714_v61   ;;  %v469_v2 = vmul.f32 %v767_v62, %v965_v35  ;;  %v477_v3 = vmul.f32 %v791_v63, %v965_v35 }
 0x120   :  { %v507_v6 = vmax.f32 %v491_v0, 0.0  ;;  %v515_v7 = vmax.f32 %v499_v1, 0.0 }
 0x121   :  { %v492_v4 = vadd.f32 %v972_v43, %v469_v2  ;;  %v500_v5 = vadd.f32 %v972_v43, %v477_v3 }
 0x123   :  { %v508_v8 = vmax.f32 %v492_v4, 0.0  ;;  %v516_v9 = vmax.f32 %v500_v5, 0.0 }
 0x125   :  { %v699_v10 = vpack.c.bf16 %v508_v8, %v507_v6  ;;  %v719_v11 = vpack.c.bf16 %v516_v9, %v515_v7 }
 0x127   :  { %723 = vst [vmem:[#allocation8 + $0x18] sm:$0xff] %v699_v10   ;;  %727 = vst [vmem:[#allocation8 + $0x38] sm:$0xff] %v719_v11  }
 0x128   :  { %906 = shalt.err (!%p903_p0)
}
 0x129   :  { %608 = dma.vmem_to_hbm [thread:$0]  %s603_s3, 1024, %s1014_s4, [#allocation5], %s925_s25, %s925_s25, %s926_s26  }
 0x12a   :  { %919 = dma.done.wait [#allocation5], 1024  }
 0x12b   :  { %920 = vsyncadd [#allocation5], 4294966272 }
 0x12c   :  { %612 = vsyncpa [#allocation4], 1 }
 0x12d   :  { %613 = vsyncpa [#allocation7], 1 }
 0x12e   :  { %614 = vsyncpa [#allocation5], 1 }

</bundles_post_ra>
